<compile_context>
chip_gen: v7x
topology: tpu7x:2x2x1
jax: 0.10.0
libtpu: 0.0.40
codegen_flags: <defaults>
</compile_context>

<pallas_src>
import jax
import jax.numpy as jnp
from jax.experimental import pallas as pl
from jax.experimental.pallas import tpu as pltpu


# Batch tile for the gridded path (perf review: 1024-4096). 2048 rows keeps the
# per-step VMEM footprint ~5 MiB (state 2*256KB, out 2*1MB lane-padded,
# weights ~40KB, h intermediate ~2MB) — well under even v5e's default budget.
_BATCH_TILE = 2048
_VMEM_LIMIT_BYTES = 32 * 1024 * 1024  # raise v5e's 16 MiB scoped default


def actor_kernel(x_ref, w1_ref, b1_ref, w2_ref, b2_ref, o_ref):
    # Hot path: both matmuls on the MXU with f32 accumulation; bias/ReLU on the
    # VPU and tanh on the EUP, all in f32. Casting x/h to the weight dtype is a
    # no-op for f32 weights and a cheap pack for bf16 weights.
    x = x_ref[...]
    h = jnp.dot(x.astype(w1_ref.dtype), w1_ref[...],
                preferred_element_type=jnp.float32) + b1_ref[...]
    h = jnp.maximum(h, 0.0)                                   # ReLU (VPU, f32)
    y = jnp.dot(h.astype(w2_ref.dtype), w2_ref[...],
                preferred_element_type=jnp.float32) + b2_ref[...]
    o_ref[...] = jnp.tanh(y).astype(o_ref.dtype)              # tanh (EUP, f32)


def _cost_estimate(B, S, H, A, x_bytes, w_bytes):
    # Advisory hint so XLA can overlap this small kernel with surrounding HLO.
    return pl.CostEstimate(
        flops=2 * B * S * H + 2 * B * H * A,
        transcendentals=B * A,
        bytes_accessed=(x_bytes * B * S + w_bytes * (S * H + H * A)
                        + 4 * (H + A) + 4 * B * A),
    )


def _dimension_semantics_candidates():
    """CORE_PARALLEL on v7x (2 TCs/chip), plain 'parallel' elsewhere / fallback."""
    try:
        kind = jax.devices()[0].device_kind.lower()
    except Exception:
        kind = ""
    if "v7" in kind:
        return [(pltpu.CORE_PARALLEL,), ("parallel",)]
    return [("parallel",)]


def _actor_forward_single(state, w1, b1, w2, b2):
    """Grid-free path for small batches: one VMEM block per operand, no grid loop."""
    B, S = state.shape
    H = w1.shape[1]
    A = w2.shape[1]
    vmem = pl.BlockSpec(memory_space=pltpu.MemorySpace.VMEM)
    return pl.pallas_call(
        actor_kernel,
        out_shape=jax.ShapeDtypeStruct((B, A), state.dtype),
        in_specs=[vmem, vmem, vmem, vmem, vmem],
        out_specs=vmem,
        cost_estimate=_cost_estimate(B, S, H, A,
                                     state.dtype.itemsize, w1.dtype.itemsize),
        compiler_params=pltpu.CompilerParams(
            vmem_limit_bytes=_VMEM_LIMIT_BYTES),
    )(state, w1, b1, w2, b2)


def _actor_forward_tiled(state, w1, b1, w2, b2, tb, dim_sem):
    """Batch-tiled path: grid over cdiv(B, tb) row tiles, no padding copies.

    Weights/biases have constant index_maps, so Pallas DMAs them once and keeps
    them VMEM-resident across all grid steps. The ragged last block (B % tb != 0)
    is handled by Pallas' partial-block masking on both the input read and the
    output writeback; since every output row depends only on its own input row,
    the junk rows in the partial block cannot affect valid rows.
    """
    B, S = state.shape
    H = w1.shape[1]
    A = w2.shape[1]
    return pl.pallas_call(
        actor_kernel,
        out_shape=jax.ShapeDtypeStruct((B, A), state.dtype),
        grid_spec=pl.GridSpec(
            grid=(pl.cdiv(B, tb),),
            in_specs=[
                pl.BlockSpec((tb, S), lambda i: (i, 0)),   # per-tile state rows
                pl.BlockSpec((S, H), lambda i: (0, 0)),    # constant -> fetched once
                pl.BlockSpec((1, H), lambda i: (0, 0)),    # constant -> fetched once
                pl.BlockSpec((H, A), lambda i: (0, 0)),    # constant -> fetched once
                pl.BlockSpec((1, A), lambda i: (0, 0)),    # constant -> fetched once
            ],
            out_specs=pl.BlockSpec((tb, A), lambda i: (i, 0)),
        ),
        compiler_params=pltpu.CompilerParams(
            dimension_semantics=dim_sem,
            vmem_limit_bytes=_VMEM_LIMIT_BYTES),
        cost_estimate=_cost_estimate(B, S, H, A,
                                     state.dtype.itemsize, w1.dtype.itemsize),
    )(state, w1, b1, w2, b2)


def actor_forward(state, w1, b1, w2, b2, *, batch_tile=_BATCH_TILE,
                  mxu_dtype=None):
    """state: (B, S) f32; w1: (S, H); b1: (1, H); w2: (H, A); b2: (1, A) -> (B, A).

    mxu_dtype=jnp.bfloat16 runs the matmuls with bf16 operands (f32 accumulate,
    f32 bias/ReLU/tanh) — ~3x fewer MXU passes and half the weight DMA on
    v6e/v7x; needs a looser (~1e-2) tolerance vs. the f32 reference.
    """
    B, S = state.shape
    H = w1.shape[1]
    A = w2.shape[1]
    assert w1.shape == (S, H) and b1.shape == (1, H)
    assert w2.shape == (H, A) and b2.shape == (1, A)
    assert batch_tile % 8 == 0

    if mxu_dtype is not None:
        # In a real deployment the weights would simply be stored in this dtype.
        w1 = w1.astype(mxu_dtype)
        w2 = w2.astype(mxu_dtype)

    if B <= batch_tile:
        # Small problem: entire thing is one block, no grid machinery.
        return _actor_forward_single(state, w1, b1, w2, b2)

    # Large batches: tile over rows (no pad/slice HBM round-trip).
    candidates = _dimension_semantics_candidates()
    last = len(candidates) - 1
    for idx, dim_sem in enumerate(candidates):
        if idx == last:
            return _actor_forward_tiled(state, w1, b1, w2, b2, batch_tile, dim_sem)
        try:
            return _actor_forward_tiled(state, w1, b1, w2, b2, batch_tile, dim_sem)
        except Exception:
            continue
    raise AssertionError("unreachable")


def init_actor_params(key, state_dim, num_actions, units_fc1=256):
    """Deterministic init mimicking PyTorch nn.Linear default (U[-1/sqrt(fan_in), 1/sqrt(fan_in)])."""
    k1, k2, k3, k4 = jax.random.split(key, 4)
    bound1 = 1.0 / jnp.sqrt(state_dim)
    bound2 = 1.0 / jnp.sqrt(units_fc1)
    w1 = jax.random.uniform(k1, (state_dim, units_fc1), jnp.float32, -bound1, bound1)
    b1 = jax.random.uniform(k2, (1, units_fc1), jnp.float32, -bound1, bound1)
    w2 = jax.random.uniform(k3, (units_fc1, num_actions), jnp.float32, -bound2, bound2)
    b2 = jax.random.uniform(k4, (1, num_actions), jnp.float32, -bound2, bound2)
    return w1, b1, w2, b2


def _reference(state, w1, b1, w2, b2):
    return jnp.tanh(jnp.maximum(state @ w1 + b1, 0.0) @ w2 + b2)


if __name__ == "__main__":
    state_dim = 32
    num_actions = 8
    units_fc1 = 256

    key = jax.random.PRNGKey(0)
    k_params, k_small, k_big = jax.random.split(key, 3)
    w1, b1, w2, b2 = init_actor_params(k_params, state_dim, num_actions, units_fc1)

    # Path 1: small batch -> grid-free single-block kernel (pure f32).
    state_small = jax.random.normal(k_small, (8, state_dim), jnp.float32)
    out_small = jax.block_until_ready(actor_forward(state_small, w1, b1, w2, b2))
    ref_small = _reference(state_small, w1, b1, w2, b2)
    assert out_small.shape == (8, num_actions)
    assert jnp.allclose(out_small, ref_small, atol=1e-5, rtol=1e-5)

    # Path 2: non-multiple batch through the tiled path. Force a small tile so
    # the pad-free cdiv grid + ragged last block (300 = 4*64 + 44) is exercised
    # at small shapes; production uses the default 2048-row tile.
    state_big = jax.random.normal(k_big, (300, state_dim), jnp.float32)
    out_big = jax.block_until_ready(
        actor_forward(state_big, w1, b1, w2, b2, batch_tile=64))
    ref_big = _reference(state_big, w1, b1, w2, b2)
    assert out_big.shape == (300, num_actions)
    assert jnp.allclose(out_big, ref_big, atol=1e-5, rtol=1e-5)

    # Path 3: bf16 MXU operands (f32 accumulate, f32 bias/ReLU/tanh) -> looser
    # tolerance; ~3x fewer MXU passes + halved weight DMA on v6e/v7x.
    out_bf16 = jax.block_until_ready(
        actor_forward(state_big, w1, b1, w2, b2, batch_tile=64,
                      mxu_dtype=jnp.bfloat16))
    assert out_bf16.shape == (300, num_actions)
    assert jnp.allclose(out_bf16, ref_big, atol=5e-2, rtol=5e-2)

    print("KERNEL_OK")
</pallas_src>

<mosaic_0001>
module attributes {stable_mosaic.version = 11 : i64} {
  func.func @actor_kernel(%arg0: memref<8x32xf32, #tpu.memory_space<vmem>>, %arg1: memref<32x256xf32, #tpu.memory_space<vmem>>, %arg2: memref<1x256xf32, #tpu.memory_space<vmem>>, %arg3: memref<256x8xf32, #tpu.memory_space<vmem>>, %arg4: memref<1x8xf32, #tpu.memory_space<vmem>>, %arg5: memref<8x8xf32, #tpu.memory_space<vmem>>) attributes {dimension_semantics = [], scalar_prefetch = 0 : i64, scratch_operands = 0 : i64, tpu.core_type = #tpu.core_type<tc>} {
    %c0 = arith.constant 0 : index
    %c0_0 = arith.constant 0 : index
    %0 = vector.load %arg0[%c0, %c0_0] : memref<8x32xf32, #tpu.memory_space<vmem>>, vector<8x32xf32>
    %c0_1 = arith.constant 0 : index
    %c0_2 = arith.constant 0 : index
    %1 = vector.load %arg1[%c0_1, %c0_2] : memref<32x256xf32, #tpu.memory_space<vmem>>, vector<32x256xf32>
    %cst = arith.constant dense<0.000000e+00> : vector<8x256xf32>
    %2 = tpu.matmul %0, %1, %cst {dimension_numbers = #tpu.dot_dimension_numbers<[1], [0], [0], [1], [0, 0, 1, 1], [], []>} : vector<8x32xf32>, vector<32x256xf32>, vector<8x256xf32> -> vector<8x256xf32>
    %c0_3 = arith.constant 0 : index
    %c0_4 = arith.constant 0 : index
    %3 = vector.load %arg2[%c0_3, %c0_4] : memref<1x256xf32, #tpu.memory_space<vmem>>, vector<1x256xf32>
    %4 = vector.broadcast %3 : vector<1x256xf32> to vector<8x256xf32>
    %5 = arith.addf %2, %4 : vector<8x256xf32>
    %cst_5 = arith.constant 0.000000e+00 : f32
    %6 = vector.broadcast %cst_5 : f32 to vector<8x256xf32>
    %7 = arith.maximumf %5, %6 : vector<8x256xf32>
    %c0_6 = arith.constant 0 : index
    %c0_7 = arith.constant 0 : index
    %8 = vector.load %arg3[%c0_6, %c0_7] : memref<256x8xf32, #tpu.memory_space<vmem>>, vector<256x8xf32>
    %cst_8 = arith.constant dense<0.000000e+00> : vector<8x8xf32>
    %9 = tpu.matmul %7, %8, %cst_8 {dimension_numbers = #tpu.dot_dimension_numbers<[1], [0], [0], [1], [0, 0, 1, 1], [], []>} : vector<8x256xf32>, vector<256x8xf32>, vector<8x8xf32> -> vector<8x8xf32>
    %c0_9 = arith.constant 0 : index
    %c0_10 = arith.constant 0 : index
    %10 = vector.load %arg4[%c0_9, %c0_10] : memref<1x8xf32, #tpu.memory_space<vmem>>, vector<1x8xf32>
    %11 = vector.broadcast %10 : vector<1x8xf32> to vector<8x8xf32>
    %12 = arith.addf %9, %11 : vector<8x8xf32>
    %13 = math.tanh %12 : vector<8x8xf32>
    %c0_11 = arith.constant 0 : index
    %c0_12 = arith.constant 0 : index
    %14 = vector.load %arg5[%c0_11, %c0_12] : memref<8x8xf32, #tpu.memory_space<vmem>>, vector<8x8xf32>
    tpu.vector_store %arg5[%c0_11, %c0_12], %13 {strides = array<i32>} : memref<8x8xf32, #tpu.memory_space<vmem>>, vector<8x8xf32>,
    return
  }
}

</mosaic_0001>

<bundles_post_ra>
// kernel: tpu_custom_call.1
= control target key start
LH: loop header
LB: loop body
LE: loop exit
PB: predicated region body
PF: predicated region fallthrough
CT: control target
= control target key end

     0   :  { %v350_v7 = vmov 0.0   ;;  %vm42_vm0 = vcmask 261120   ;;  %s523_s0 = inlined_call_operand.vmem [shape: f32[8,32], index: 0, kind: input, shape index: {}]   ;;  %s524_s1 = inlined_call_operand.vmem [shape: f32[32,256], index: 1, kind: input, shape index: {}]   ;;  %s525_s2 = inlined_call_operand.vmem [shape: f32[1,256], index: 2, kind: input, shape index: {}]   ;;  %s526_s3 = inlined_call_operand.vmem [shape: f32[256,8], index: 3, kind: input, shape index: {}]   ;;  %s527_s4 = inlined_call_operand.vmem [shape: f32[1,8], index: 4, kind: input, shape index: {}]   ;;  %s528_s5 = inlined_call_operand.hbm [shape: f32[8,8], index: 5, kind: output, shape index: {}]  }
   0x1   :  { %v23_v0 = vld [vmem:[%s524_s1 + $0x8] sm:$0xff]  ;;  %v25_v1 = vld [vmem:[%s524_s1 + $0x18] sm:$0xff]  ;;  %v22_v2 = vld [vmem:[%s524_s1] sm:$0xff]  ;;  %110 = vmatprep.mubr.f32.mxu0 %v350_v7 }
   0x2   :  { %v282_v3 = vpack.c.bf16 %v25_v1, %v23_v0  ;;  %v24_v4 = vld [vmem:[%s524_s1 + $0x10] sm:$0xff]  ;;  %v27_v5 = vld [vmem:[%s524_s1 + $0x28] sm:$0xff]  ;;  %v29_v6 = vld [vmem:[%s524_s1 + $0x38] sm:$0xff] }
   0x3   :  { %v284_v8 = vpack.c.bf16 %v24_v4, %v22_v2  ;;  %v286_v9 = vpack.c.bf16 %v29_v6, %v27_v5  ;;  %v26_v10 = vld [vmem:[%s524_s1 + $0x20] sm:$0xff]  ;;  %v28_v11 = vld [vmem:[%s524_s1 + $0x30] sm:$0xff]  ;;  %v136_v13 = vld [vmem:[%s526_s3 + $0x88] sm:$0xff] }
   0x4   :  { %283 = vmatprep.subr.bf16.mxu0 %v282_v3  ;;  %v135_v12 = vld [vmem:[%s526_s3 + $0x80] sm:$0xff]  ;;  %v288_v15 = vpack.c.bf16 %v28_v11, %v26_v10  ;;  %v120_v17 = vld [vmem:[%s526_s3 + $0x8] sm:$0xff]  ;;  %v137_v18 = vld [vmem:[%s526_s3 + $0x90] sm:$0xff] }
   0x5   :  { %v119_v14 = vld [vmem:[%s526_s3] sm:$0xff]  ;;  %285 = vmatpush1.bf16.msra.mxu0 %v284_v8  ;;  %v290_v16 = vpack.c.bf16 %v136_v13, %v135_v12  ;;  %v138_v19 = vld [vmem:[%s526_s3 + $0x98] sm:$0xff]  ;;  %v121_v22 = vld [vmem:[%s526_s3 + $0x10] sm:$0xff] }
   0x6   :  { %287 = vmatprep.subr.bf16.mxu0 %v286_v9  ;;  %v292_v20 = vpack.c.bf16 %v120_v17, %v119_v14  ;;  %v294_v21 = vpack.c.bf16 %v138_v19, %v137_v18  ;;  %v122_v23 = vld [vmem:[%s526_s3 + $0x18] sm:$0xff]  ;;  %v139_v24 = vld [vmem:[%s526_s3 + $0xa0] sm:$0xff]  ;;  %v140_v25 = vld [vmem:[%s526_s3 + $0xa8] sm:$0xff] }
   0x7   :  { %291 = vmatprep.subr.bf16.mxu1 %v290_v16  ;;  %v296_v26 = vpack.c.bf16 %v122_v23, %v121_v22  ;;  %v21_v27 = vld [vmem:[%s523_s0] sm:$0xff]  ;;  %v298_v28 = vpack.c.bf16 %v140_v25, %v139_v24  ;;  %v124_v30 = vld [vmem:[%s526_s3 + $0x28] sm:$0xff]  ;;  %v141_v31 = vld [vmem:[%s526_s3 + $0xb0] sm:$0xff] }
   0x8   :  { %293 = vmatpush3.bf16.msra.mxu1 %v292_v20  ;;  %v123_v29 = vld [vmem:[%s526_s3 + $0x20] sm:$0xff]  ;;  %v142_v32 = vld [vmem:[%s526_s3 + $0xb8] sm:$0xff]  ;;  %v125_v35 = vld [vmem:[%s526_s3 + $0x30] sm:$0xff] }
   0x9   :  { %289 = vmatpush1.bf16.msra.mxu0 %v288_v15  ;;  %295 = vmatprep.subr.bf16.mxu1 %v294_v21  ;;  %v300_v33 = vpack.c.bf16 %v124_v30, %v123_v29  ;;  %v302_v34 = vpack.c.bf16 %v142_v32, %v141_v31  ;;  %v126_v36 = vld [vmem:[%s526_s3 + $0x38] sm:$0xff] }
   0xc   :  { %245 = vmatmul.mubr.msk.f32.vlgmr.msra.gmra.mrb[0].mxu0 %vm42_vm0, %v21_v27  ;;  %297 = vmatpush3.bf16.msra.mxu1 %v296_v26 }
   0xd   :  { %299 = vmatprep.subr.bf16.mxu1 %v298_v28 }
   0xe   :  { %10 = vsyncpa [#allocation3], 0  ;;  %v143_v37 = vld [vmem:[%s526_s3 + $0xc0] sm:$0xff]  ;;  %v144_v38 = vld [vmem:[%s526_s3 + $0xc8] sm:$0xff]  ;;  %v304_v39 = vpack.c.bf16 %v126_v36, %v125_v35  ;;  %v32_v62 = vlaneseq  ;;  %vm229_vm1 = vcmask 64512  }
   0xf   :  { %v306_v40 = vpack.c.bf16 %v144_v38, %v143_v37  ;;  %v127_v41 = vld [vmem:[%s526_s3 + $0x40] sm:$0xff]  ;;  %v128_v42 = vld [vmem:[%s526_s3 + $0x48] sm:$0xff]  ;;  %v145_v43 = vld [vmem:[%s526_s3 + $0xd0] sm:$0xff] }
  0x10   :  { %301 = vmatpush3.bf16.msra.mxu1 %v300_v33  ;;  %v146_v44 = vld [vmem:[%s526_s3 + $0xd8] sm:$0xff]  ;;  %v308_v45 = vpack.c.bf16 %v128_v42, %v127_v41  ;;  %v129_v47 = vld [vmem:[%s526_s3 + $0x50] sm:$0xff]  ;;  %v147_v49 = vld [vmem:[%s526_s3 + $0xe0] sm:$0xff]  ;;  %v33_v63 = vshrl.u32 %v32_v62, 7 }
  0x11   :  { %303 = vmatprep.subr.bf16.mxu1 %v302_v34  ;;  %v310_v46 = vpack.c.bf16 %v146_v44, %v145_v43  ;;  %v130_v48 = vld [vmem:[%s526_s3 + $0x58] sm:$0xff]  ;;  %v148_v50 = vld [vmem:[%s526_s3 + $0xe8] sm:$0xff]  ;;  %v131_v53 = vld [vmem:[%s526_s3 + $0x60] sm:$0xff] }
  0x12   :  { %v312_v51 = vpack.c.bf16 %v130_v48, %v129_v47  ;;  %v314_v52 = vpack.c.bf16 %v148_v50, %v147_v49  ;;  %v132_v54 = vld [vmem:[%s526_s3 + $0x68] sm:$0xff]  ;;  %v149_v56 = vld [vmem:[%s526_s3 + $0xf0] sm:$0xff]  ;;  %v150_v57 = vld [vmem:[%s526_s3 + $0xf8] sm:$0xff]  ;;  %v34_v0 = vsub.s32 0, %v33_v63  ;;  %v38_v2 = vsub.s32 1, %v33_v63 }
  0x13   :  { %v316_v55 = vpack.c.bf16 %v132_v54, %v131_v53  ;;  %v318_v58 = vpack.c.bf16 %v150_v57, %v149_v56  ;;  %v133_v59 = vld [vmem:[%s526_s3 + $0x70] sm:$0xff]  ;;  %v134_v60 = vld [vmem:[%s526_s3 + $0x78] sm:$0xff]  ;;  %v30_v1 = vld [vmem:[%s525_s2] sm:$0x3]  ;;  %s351_s2 = smov [#allocation2]  }
  0x14   :  { %305 = vmatpush3.bf16.msra.mxu1 %v304_v39  ;;  %v320_v61 = vpack.c.bf16 %v134_v60, %v133_v59  ;;  %v35_v3 = vrot.slane %v30_v1, %v34_v0  ;;  %v39_v4 = vrot.slane %v30_v1, %v38_v2  ;;  %v246_v12 = vld [vmem:[%s527_s4] ss:$0 sm:$0xff]  ;;  %s237_s23 = sshll.u32 %s351_s2, 4  ;;  %s238_s23 = int_to_ptr.vmem [resolvable:$true] %s237_s23 }
  0x15   :  { %307 = vmatprep.subr.bf16.mxu1 %v306_v40  ;;  %s326_s24 = scalar_lea.vmem %s238_s23, 128  ;;  %p331_p1 = scmp.lt.s32.totalorder %s238_s23, %s238_s23 }
  0x16   :  { %p327_p0 = scmp.ne.s32.totalorder %s238_s23, %s326_s24  ;;  %p332_p2 = scmp.lt.s32.totalorder %s326_s24, %s326_s24 }
  0x18   :  { %309 = vmatpush3.bf16.msra.mxu1 %v308_v45  ;;  %p333_p3 = por %p332_p2, %p331_p1 }
  0x19   :  { %311 = vmatprep.subr.bf16.mxu1 %v310_v46 }
  0x1a   :  { %p334_p4 = pnand %p333_p3, %p327_p0 }
  0x1c   :  { %313 = vmatpush3.bf16.msra.mxu1 %v312_v51 }
  0x1d   :  { %315 = vmatprep.subr.bf16.mxu1 %v314_v52 }
  0x20   :  { %317 = vmatpush3.bf16.msra.mxu1 %v316_v55 }
  0x21   :  { %319 = vmatprep.subr.bf16.mxu1 %v318_v58 }
  0x24   :  { %321 = vmatpush3.bf16.msra.mxu1 %v320_v61 }
  0xdf   :  { %v112_v5 = vpop.f32.mrb[0].mxu0 }
  0xe0   :  { %v113_v6 = vadd.f32 %v112_v5, %v35_v3  ;;  %v114_v7 = vpop.f32.mrb[1].mxu0 }
  0xe1   :  { %v115_v8 = vadd.f32 %v114_v7, %v39_v4 }
  0xe2   :  { %v117_v10 = vmax.f32 %v113_v6, 0.0 }
  0xe3   :  { %v118_v9 = vmax.f32 %v115_v8, 0.0 }
  0xe5   :  { %222 = vmatprep.mubr.f32.mxu1 %v118_v9 }
  0xe6   :  { %223 = vmatmul.mubr.f32.vlgmr.msra.gmra.mrb[0].mxu1 %v117_v10 }
 0x1b9   :  { %v279_v11 = vpop.f32.mrb[0].mxu1 }
 0x1ba   :  { %v280_v13 = vpop.f32.mrb[1].mxu1 }
 0x1bb   :  { %v281_v14 = vadd.f32 %v280_v13, %v279_v11 }
 0x1bd   :  { %v225_v15 = vadd.f32 %v281_v14, %v246_v12 }
 0x1bf   :  { %324 = vtanh.f32 %v225_v15 }
 0x1c9   :  { %v325_v16 = vpop.eup %324 }
 0x1ca   :  { %230 = vst.msk [vmem:[#allocation2] sm:$0xff] %vm229_vm1, %v325_v16 }
 0x1cb   :  { %337 = shalt.err (!%p334_p4)
}
 0x1cc   :  { %s338_s4 = scalar_lea.hbm %s528_s5, 128 }
 0x1cd   :  { %p339_p5 = scmp.ne.s32.totalorder %s528_s5, %s338_s4  ;;  %p342_p6 = scmp.lt.u32.totalorder %s338_s4, %s528_s5 }
 0x1cf   :  { %p344_p7 = pnand %p342_p6, %p339_p5 }
 0x1d1   :  { %347 = shalt.err (!%p344_p7)
}
 0x1d2   :  { %240 = dma.vmem_to_hbm [thread:$0]  %s238_s23, 128, %s528_s5, [#allocation3]  }
 0x1d3   :  { %348 = dma.done.wait [#allocation3], 128  }
 0x1d4   :  { %349 = vsyncadd [#allocation3], 4294967168 }
 0x1d5   :  { %244 = vsyncpa [#allocation3], 1 }

</bundles_post_ra>
